<compile_context>
chip_gen: v5e
topology: v5e:2x2
jax: 0.10.0
libtpu: 0.0.40
codegen_flags: <defaults>
</compile_context>

<pallas_src>
import functools

import jax
import jax.numpy as jnp
from jax.experimental import pallas as pl
from jax.experimental.pallas import tpu as pltpu


_MIB = 1024 * 1024
_SCRATCH_MARGIN = 8 * _MIB      # Mosaic internal scratch / misc headroom
_MIN_VMEM_LIMIT = 32 * _MIB     # never ask Mosaic for less than this
_TARGET_TILE_BYTES = 4 * _MIB   # two-pass: per-step DMA >> ~0.35us step overhead


# ----------------------------- Pallas kernels ------------------------------ #

def _se_fused_kernel(x_ref, w1t_ref, w2_ref, o_ref):
    """Fused SE block for a (TB, C, HW) batch tile.

    x_ref  : (TB, C, HW)   activation tile (channels on sublanes, spatial on lanes)
    w1t_ref: (C, Cr)       = W1.T  (fc1 weight, transposed once on the host side)
    w2_ref : (C, Cr)       = W2    (fc2 weight, already (out=C, in=Cr))
    """
    hw = x_ref.shape[-1]
    inv_hw = jnp.float32(1.0 / hw)

    # Squeeze: global average pool over the spatial (lane) axis with f32
    # accumulation.  NOTE: no full-tile f32 copy of x is kept live -- the cast
    # is folded into the reduction, so in-kernel VMEM pressure stays ~1x tile.
    y = jnp.sum(x_ref[...], axis=-1, keepdims=True, dtype=jnp.float32) * inv_hw  # (TB, C, 1)

    w1t = w1t_ref[...].astype(jnp.float32)    # (C, Cr)
    w2 = w2_ref[...].astype(jnp.float32)      # (C, Cr)

    # Excite: relu(y @ W1.T) @ W2.T, via axis-aligned broadcast+reduce (tiny
    # C x Cr work; stays on VPU/XLU, no MXU warm-up / relayouts needed).
    z = jnp.maximum(jnp.sum(w1t[None] * y, axis=1, keepdims=True), 0.0)  # (TB, 1, Cr)
    s = jax.nn.sigmoid(jnp.sum(w2[None] * z, axis=2, keepdims=True))     # (TB, C, 1)

    # Scale: re-read x and multiply by the gate cast to the input dtype
    # (bf16 multiply is VALU-native on v6e/v7x; f32 inputs stay f32).
    # TODO(synk): on v5e (no bf16 VALU) an f32 multiply for bf16 inputs may be
    # preferable; not specialized here.
    o_ref[...] = (x_ref[...] * s.astype(x_ref.dtype)).astype(o_ref.dtype)


def _pool_kernel(x_ref, s_ref):
    """Fallback pass 1: accumulate per-row spatial sums over spatial tiles."""
    @pl.when(pl.program_id(1) == 0)
    def _():
        s_ref[...] = jnp.zeros_like(s_ref)
    s_ref[...] += jnp.sum(x_ref[...], axis=1, keepdims=True, dtype=jnp.float32)


def _apply_kernel(x_ref, g_ref, o_ref):
    """Fallback pass 2: out = x * gate (gate broadcast over the lane axis)."""
    o_ref[...] = (x_ref[...] * g_ref[...].astype(x_ref.dtype)).astype(o_ref.dtype)


# ------------------------------ Planning utils ----------------------------- #

def _vmem_capacity_bytes() -> int:
    try:
        return int(pltpu.get_tpu_info().vmem_capacity_bytes)
    except Exception:
        return 64 * _MIB   # conservative (v7x per-TensorCore VMEM)


def _num_tensorcores() -> int:
    """Best-effort TensorCore count per chip (2 on v7x, 1 on v5e/v6e)."""
    try:
        info = pltpu.get_tpu_info()
        for name in ("num_cores", "core_count", "num_tensorcores",
                     "tensorcores_per_chip", "cores_per_chip"):
            v = getattr(info, name, None)
            if isinstance(v, int) and v > 0:
                return int(v)
    except Exception:
        pass
    return 1


def _largest_divisor_leq(n: int, cap: int) -> int:
    cap = max(1, min(n, cap))
    for d in range(cap, 0, -1):
        if n % d == 0:
            return d
    return 1


def _pick_tile(dim: int, unit: int, max_elems: int) -> int:
    """Largest tile <= max_elems that divides dim and is a multiple of `unit`;
    falls back to the full dim (always a legal full-extent block)."""
    if dim <= max_elems:
        return dim
    best = 0
    t = unit
    while t <= max_elems:
        if dim % t == 0:
            best = t
        t += unit
    # TODO(synk): pathological non-divisible dims fall back to a full-extent
    # block, which may overshoot the VMEM budget for extreme shapes.
    return best if best > 0 else dim


# ------------------------------ Host wrappers ------------------------------ #

@functools.partial(jax.jit, static_argnames=("tb", "vmem_limit"))
def _se_fused(x, w1, w2, *, tb, vmem_limit):
    b, c, h, w_ = x.shape
    hw = h * w_
    cr = w1.shape[0]
    x3 = x.reshape(b, c, hw)          # free reshape, NCHW-native (no transpose)
    w1t = jnp.transpose(w1)           # tiny (Cr, C) -> (C, Cr), done once by XLA

    itemsize = jnp.dtype(x.dtype).itemsize
    w_itemsize = jnp.dtype(w1.dtype).itemsize
    cost = pl.CostEstimate(
        flops=int(3 * b * c * hw + 4 * b * c * cr),
        transcendentals=int(b * c),
        bytes_accessed=int(2 * b * c * hw * itemsize + 2 * c * cr * w_itemsize),
    )

    out3 = pl.pallas_call(
        _se_fused_kernel,
        out_shape=jax.ShapeDtypeStruct((b, c, hw), x.dtype),
        grid_spec=pltpu.PrefetchScalarGridSpec(
            num_scalar_prefetch=0,
            grid=(b // tb,),
            in_specs=[
                pl.BlockSpec((tb, c, hw), lambda i: (i, 0, 0)),
                pl.BlockSpec((c, cr), lambda i: (0, 0)),
                pl.BlockSpec((c, cr), lambda i: (0, 0)),
            ],
            out_specs=pl.BlockSpec((tb, c, hw), lambda i: (i, 0, 0)),
        ),
        compiler_params=pltpu.CompilerParams(
            dimension_semantics=("parallel",),
            vmem_limit_bytes=vmem_limit,
        ),
        cost_estimate=cost,
    )(x3, w1t, w2)
    return out3.reshape(b, c, h, w_)


@functools.partial(jax.jit, static_argnames=("tr", "tc", "vmem_limit"))
def _se_two_pass_impl(x, w1, w2, *, tr, tc, vmem_limit):
    b, c, h, w_ = x.shape
    hw = h * w_
    rows = b * c
    x2 = x.reshape(rows, hw)          # free reshape (no transpose)
    itemsize = jnp.dtype(x.dtype).itemsize

    # Pass 1: tiled global-average-pool (accumulate over spatial tiles).
    pool_cost = pl.CostEstimate(
        flops=int(rows * hw),
        transcendentals=0,
        bytes_accessed=int(rows * hw * itemsize + rows * 4),
    )
    sums = pl.pallas_call(
        _pool_kernel,
        out_shape=jax.ShapeDtypeStruct((rows, 1), jnp.float32),
        grid_spec=pltpu.PrefetchScalarGridSpec(
            num_scalar_prefetch=0,
            grid=(rows // tr, hw // tc),
            in_specs=[pl.BlockSpec((tr, tc), lambda i, j: (i, j))],
            out_specs=pl.BlockSpec((tr, 1), lambda i, j: (i, 0)),
        ),
        compiler_params=pltpu.CompilerParams(
            dimension_semantics=("parallel", "arbitrary"),
            vmem_limit_bytes=vmem_limit,
        ),
        cost_estimate=pool_cost,
    )(x2)

    # Tiny (B, C) FC glue (left to XLA; negligible vs. the bandwidth passes).
    y = sums.reshape(b, c) / jnp.float32(hw)
    z = jnp.maximum(jnp.dot(y, w1.T), 0.0)
    gates = jax.nn.sigmoid(jnp.dot(z, w2.T)).reshape(rows, 1).astype(jnp.float32)

    # Pass 2: gated elementwise multiply.
    apply_cost = pl.CostEstimate(
        flops=int(rows * hw),
        transcendentals=0,
        bytes_accessed=int(2 * rows * hw * itemsize + rows * 4),
    )
    out2 = pl.pallas_call(
        _apply_kernel,
        out_shape=jax.ShapeDtypeStruct((rows, hw), x.dtype),
        grid_spec=pltpu.PrefetchScalarGridSpec(
            num_scalar_prefetch=0,
            grid=(rows // tr, hw // tc),
            in_specs=[
                pl.BlockSpec((tr, tc), lambda i, j: (i, j)),
                pl.BlockSpec((tr, 1), lambda i, j: (i, 0)),
            ],
            out_specs=pl.BlockSpec((tr, tc), lambda i, j: (i, j)),
        ),
        compiler_params=pltpu.CompilerParams(
            dimension_semantics=("parallel", "parallel"),
            vmem_limit_bytes=vmem_limit,
        ),
        cost_estimate=apply_cost,
    )(x2, gates)
    return out2.reshape(b, c, h, w_)


def se_block_forward(x, w1, w2):
    """SE block forward. x: (B, C, H, W); w1: (C//r, C); w2: (C, C//r)."""
    b, c, h, w_ = x.shape
    hw = h * w_
    cr = w1.shape[0]
    itemsize = jnp.dtype(x.dtype).itemsize
    w_bytes = int(w1.size * jnp.dtype(w1.dtype).itemsize
                  + w2.size * jnp.dtype(w2.dtype).itemsize)

    cap = _vmem_capacity_bytes()
    usable = max(4 * _MIB, cap - _SCRATCH_MARGIN)

    # TODO(synk): for HW not a multiple of 128 (7x7, 14x14, ...) lane occupancy
    # is partial; an NHWC / C-on-lanes layout would be lane-dense but the input
    # contract here is NCHW, so it is not implemented.

    # --------------------- Fused single-pass path ------------------------- #
    # Live set per grid step: 2x in-tile + 2x out-tile (double-buffered) +
    # double-buffered weights + small f32 FC intermediates.
    slab = c * hw * itemsize                   # one batch's (C, HW) slab
    fused_budget = usable - 2 * w_bytes
    tb_cap = fused_budget // (4 * slab) if slab > 0 else 0
    if tb_cap >= 1:
        ncores = _num_tensorcores()
        if ncores > 1 and b >= ncores:
            # v7x: keep >= ncores grid steps so every TensorCore gets work.
            # TODO(synk): B=1 on a 2-TC chip leaves one core idle; routing to a
            # (B*C)-row layout or CORE_PARALLEL is not implemented.
            tb_cap = min(tb_cap, max(1, b // ncores))
        # 1-TC chips (v5e/v6e): no clamp -- one big grid step is best.
        tb = _largest_divisor_leq(b, int(tb_cap))
        inter = 4 * tb * c * (cr + 2)          # f32 broadcast products / gates
        vmem_limit = int(min(cap, max(_MIN_VMEM_LIMIT,
                                      4 * tb * slab + 2 * w_bytes + inter
                                      + _SCRATCH_MARGIN)))
        return _se_fused(x, w1, w2, tb=tb, vmem_limit=vmem_limit)

    # ----------------------- Two-pass fallback ----------------------------- #
    # Reads x twice + writes once (3x HBM traffic) but never needs a whole
    # (C, HW) slab resident.
    rows = b * c
    block_budget = usable // 4                 # 2x in + 2x out blocks live
    tc_cap_elems = max(128, block_budget // (8 * itemsize))
    tc = _pick_tile(hw, 128, tc_cap_elems)
    # Row tile: each block ~>= _TARGET_TILE_BYTES of DMA (amortizes per-step
    # overhead), capped by the VMEM block budget.
    tr_cap = max(8, block_budget // (tc * itemsize))
    tr_target = max(8, _TARGET_TILE_BYTES // (tc * itemsize))
    tr = _pick_tile(rows, 8, min(tr_cap, tr_target))
    vmem_limit = int(min(cap, max(_MIN_VMEM_LIMIT,
                                  4 * tr * tc * itemsize + _SCRATCH_MARGIN)))
    return _se_two_pass_impl(x, w1, w2, tr=tr, tc=tc, vmem_limit=vmem_limit)


def se_reference(x, w1, w2):
    """Pure-JAX reference matching the PyTorch se_block forward."""
    y = jnp.mean(x, axis=(2, 3))                       # (B, C)
    z = jnp.maximum(jnp.dot(y, w1.T), 0.0)             # (B, C/r)
    s = jax.nn.sigmoid(jnp.dot(z, w2.T))               # (B, C)
    return x * s[:, :, None, None]


# ---------------------------------- Main ----------------------------------- #

if __name__ == "__main__":
    key = jax.random.PRNGKey(0)
    kx, k1, k2 = jax.random.split(key, 3)

    # Shapes consistent with se_block defaults: channel=64, reduction=16.
    B, C, H, W = 2, 64, 16, 16
    RED = 16
    CR = C // RED

    x = jax.random.normal(kx, (B, C, H, W), dtype=jnp.float32)
    # Deterministic synthetic Linear weights (PyTorch layout: (out, in), no bias).
    w1 = 0.3 * jax.random.normal(k1, (CR, C), dtype=jnp.float32)
    w2 = 0.3 * jax.random.normal(k2, (C, CR), dtype=jnp.float32)

    out = se_block_forward(x, w1, w2)
    out = jax.block_until_ready(out)

    ref = se_reference(x, w1, w2)
    assert out.shape == (B, C, H, W)
    assert jnp.allclose(out, ref, atol=1e-5, rtol=1e-5), (
        float(jnp.max(jnp.abs(out - ref))))

    print("KERNEL_OK")
</pallas_src>

<mosaic_0001>
module attributes {stable_mosaic.version = 11 : i64} {
  func.func @_se_fused_kernel(%arg0: i32, %arg1: memref<2x64x256xf32, #tpu.memory_space<vmem>>, %arg2: memref<64x4xf32, #tpu.memory_space<vmem>>, %arg3: memref<64x4xf32, #tpu.memory_space<vmem>>, %arg4: memref<2x64x256xf32, #tpu.memory_space<vmem>>) attributes {dimension_semantics = [#tpu.dimension_semantics<parallel>], iteration_bounds = array<i64: 1>, scalar_prefetch = 0 : i64, scratch_operands = 0 : i64, tpu.core_type = #tpu.core_type<tc>, window_params = [{transform_indices = @transform_0, window_bounds = array<i64: 2, 64, 256>}, {pipeline_mode = #tpu.pipeline_mode<synchronous>, transform_indices = @transform_1, window_bounds = array<i64: 64, 4>}, {pipeline_mode = #tpu.pipeline_mode<synchronous>, transform_indices = @transform_2, window_bounds = array<i64: 64, 4>}, {transform_indices = @transform_3, window_bounds = array<i64: 2, 64, 256>}]} {
    %c0 = arith.constant 0 : index
    %c0_0 = arith.constant 0 : index
    %c0_1 = arith.constant 0 : index
    %0 = vector.load %arg1[%c0, %c0_0, %c0_1] : memref<2x64x256xf32, #tpu.memory_space<vmem>>, vector<2x64x256xf32>
    %cst = arith.constant dense<0.000000e+00> : vector<2x64xf32>
    %1 = vector.multi_reduction <add>, %0, %cst [2] : vector<2x64x256xf32> to vector<2x64xf32>
    %2 = vector.shape_cast %1 : vector<2x64xf32> to vector<2x64x1xf32>
    %cst_2 = arith.constant 3.906250e-03 : f32
    %3 = vector.broadcast %cst_2 : f32 to vector<2x64x1xf32>
    %4 = arith.mulf %2, %3 : vector<2x64x1xf32>
    %c0_3 = arith.constant 0 : index
    %c0_4 = arith.constant 0 : index
    %5 = vector.load %arg2[%c0_3, %c0_4] : memref<64x4xf32, #tpu.memory_space<vmem>>, vector<64x4xf32>
    %c0_5 = arith.constant 0 : index
    %c0_6 = arith.constant 0 : index
    %6 = vector.load %arg3[%c0_5, %c0_6] : memref<64x4xf32, #tpu.memory_space<vmem>>, vector<64x4xf32>
    %7 = vector.shape_cast %5 : vector<64x4xf32> to vector<1x64x4xf32>
    %8 = vector.broadcast %7 : vector<1x64x4xf32> to vector<2x64x4xf32>
    %9 = vector.broadcast %4 : vector<2x64x1xf32> to vector<2x64x4xf32>
    %10 = arith.mulf %8, %9 : vector<2x64x4xf32>
    %cst_7 = arith.constant dense<0.000000e+00> : vector<2x4xf32>
    %11 = vector.multi_reduction <add>, %10, %cst_7 [1] : vector<2x64x4xf32> to vector<2x4xf32>
    %12 = vector.shape_cast %11 : vector<2x4xf32> to vector<2x1x4xf32>
    %cst_8 = arith.constant 0.000000e+00 : f32
    %13 = vector.broadcast %cst_8 : f32 to vector<2x1x4xf32>
    %14 = arith.maximumf %12, %13 : vector<2x1x4xf32>
    %15 = vector.shape_cast %6 : vector<64x4xf32> to vector<1x64x4xf32>
    %16 = vector.broadcast %15 : vector<1x64x4xf32> to vector<2x64x4xf32>
    %17 = vector.broadcast %14 : vector<2x1x4xf32> to vector<2x64x4xf32>
    %18 = arith.mulf %16, %17 : vector<2x64x4xf32>
    %cst_9 = arith.constant dense<0.000000e+00> : vector<2x64xf32>
    %19 = vector.multi_reduction <add>, %18, %cst_9 [2] : vector<2x64x4xf32> to vector<2x64xf32>
    %20 = vector.shape_cast %19 : vector<2x64xf32> to vector<2x64x1xf32>
    %21 = arith.negf %20 : vector<2x64x1xf32>
    %22 = math.exp %21 : vector<2x64x1xf32>
    %cst_10 = arith.constant 1.000000e+00 : f32
    %23 = vector.broadcast %cst_10 : f32 to vector<2x64x1xf32>
    %24 = arith.addf %23, %22 : vector<2x64x1xf32>
    %25 = arith.divf %23, %24 : vector<2x64x1xf32>
    %c0_11 = arith.constant 0 : index
    %c0_12 = arith.constant 0 : index
    %c0_13 = arith.constant 0 : index
    %26 = vector.load %arg1[%c0_11, %c0_12, %c0_13] : memref<2x64x256xf32, #tpu.memory_space<vmem>>, vector<2x64x256xf32>
    %27 = vector.broadcast %25 : vector<2x64x1xf32> to vector<2x64x256xf32>
    %28 = arith.mulf %26, %27 : vector<2x64x256xf32>
    %c0_14 = arith.constant 0 : index
    %c0_15 = arith.constant 0 : index
    %c0_16 = arith.constant 0 : index
    %29 = vector.load %arg4[%c0_14, %c0_15, %c0_16] : memref<2x64x256xf32, #tpu.memory_space<vmem>>, vector<2x64x256xf32>
    tpu.vector_store %arg4[%c0_14, %c0_15, %c0_16], %28 {strides = array<i32>} : memref<2x64x256xf32, #tpu.memory_space<vmem>>, vector<2x64x256xf32>,
    return
  }
  func.func @transform_0(%arg0: i32) -> (i32, i32, i32) {
    %c0_i32 = arith.constant 0 : i32
    %c0_i32_0 = arith.constant 0 : i32
    %c0_i32_1 = arith.constant 0 : i32
    return %arg0, %c0_i32, %c0_i32_0 : i32, i32, i32
  }
  func.func @transform_1(%arg0: i32) -> (i32, i32) {
    %c0_i32 = arith.constant 0 : i32
    %c0_i32_0 = arith.constant 0 : i32
    %c0_i32_1 = arith.constant 0 : i32
    return %c0_i32, %c0_i32_0 : i32, i32
  }
  func.func @transform_2(%arg0: i32) -> (i32, i32) {
    %c0_i32 = arith.constant 0 : i32
    %c0_i32_0 = arith.constant 0 : i32
    %c0_i32_1 = arith.constant 0 : i32
    return %c0_i32, %c0_i32_0 : i32, i32
  }
  func.func @transform_3(%arg0: i32) -> (i32, i32, i32) {
    %c0_i32 = arith.constant 0 : i32
    %c0_i32_0 = arith.constant 0 : i32
    %c0_i32_1 = arith.constant 0 : i32
    return %arg0, %c0_i32, %c0_i32_0 : i32, i32, i32
  }
}

</mosaic_0001>

<bundles_post_ra>
// kernel: _se_fused.1
= control target key start
LH: loop header
LB: loop body
LE: loop exit
PB: predicated region body
PF: predicated region fallthrough
CT: control target
= control target key end

     0   :  { %vm142_vm0 = vcmask 31744   ;;  %s1320_s0 = inlined_call_operand.vmem [shape: f32[2,64,256], index: 0, kind: input, shape index: {}]   ;;  %s1321_s1 = inlined_call_operand.vmem [shape: f32[64,4], index: 1, kind: input, shape index: {}]   ;;  %s1322_s2 = inlined_call_operand.vmem [shape: f32[64,4], index: 2, kind: input, shape index: {}]   ;;  %s1323_s3 = inlined_call_operand.vmem [shape: f32[2,64,256], index: 3, kind: output, shape index: {}]  }
   0x1   :  { %v736_v0 = vld [vmem:[%s1320_s0 + $0x80] sm:$0xff]  ;;  %v741_v1 = vld [vmem:[%s1320_s0 + $0x88] sm:$0xff]  ;;  %v32_v9 = vld [vmem:[%s1320_s0 + $0x90] sm:$0xff] }
   0x2   :  { %v746_v2 = vld [vmem:[%s1320_s0] sm:$0xff]  ;;  %v70_v3 = vadd.f32 %v741_v1, %v736_v0  ;;  %v753_v4 = vld [vmem:[%s1320_s0 + $0x8] sm:$0xff]  ;;  %v33_v10 = vld [vmem:[%s1320_s0 + $0x98] sm:$0xff] }
   0x3   :  { %v758_v5 = vld [vmem:[%s1320_s0 + $0x20] sm:$0xff]  ;;  %v763_v6 = vld [vmem:[%s1320_s0 + $0x28] sm:$0xff]  ;;  %v46_v7 = vadd.f32 %v753_v4, %v746_v2  ;;  %v778_v11 = vld [vmem:[%s1320_s0 + $0x10] sm:$0xff]  ;;  %v73_v15 = vadd.f32 %v33_v10, %v32_v9 }
   0x4   :  { %v52_v8 = vadd.f32 %v763_v6, %v758_v5  ;;  %71 = vadd.xlane.f32.xlu1 %v70_v3  ;;  %v783_v12 = vld [vmem:[%s1320_s0 + $0x18] sm:$0xff]  ;;  %v788_v13 = vld [vmem:[%s1320_s0 + $0xa0] sm:$0xff]  ;;  %v793_v14 = vld [vmem:[%s1320_s0 + $0xa8] sm:$0xff] }
   0x5   :  { %47 = vadd.xlane.f32.xlu0 %v46_v7  ;;  %v49_v16 = vadd.f32 %v783_v12, %v778_v11  ;;  %v76_v17 = vadd.f32 %v793_v14, %v788_v13  ;;  %v36_v18 = vld [vmem:[%s1320_s0 + $0xb0] sm:$0xff]  ;;  %v37_v19 = vld [vmem:[%s1320_s0 + $0xb8] sm:$0xff]  ;;  %v818_v22 = vld [vmem:[%s1320_s0 + $0x40] sm:$0xff] }
   0x6   :  { %53 = vadd.xlane.f32.xlu2 %v52_v8  ;;  %v808_v20 = vld [vmem:[%s1320_s0 + $0x30] sm:$0xff]  ;;  %v813_v21 = vld [vmem:[%s1320_s0 + $0x38] sm:$0xff]  ;;  %v823_v23 = vld [vmem:[%s1320_s0 + $0x48] sm:$0xff]  ;;  %v79_v24 = vadd.f32 %v37_v19, %v36_v18 }
   0x7   :  { %v55_v25 = vadd.f32 %v813_v21, %v808_v20  ;;  %v58_v26 = vadd.f32 %v823_v23, %v818_v22  ;;  %v832_v27 = vld [vmem:[%s1320_s0 + $0x50] sm:$0xff]  ;;  %v837_v28 = vld [vmem:[%s1320_s0 + $0x58] sm:$0xff]  ;;  %v38_v29 = vld [vmem:[%s1320_s0 + $0xc0] sm:$0xff] }
   0x8   :  { %v39_v30 = vld [vmem:[%s1320_s0 + $0xc8] sm:$0xff]  ;;  %v848_v31 = vld [vmem:[%s1320_s0 + $0xd0] sm:$0xff]  ;;  %v853_v32 = vld [vmem:[%s1320_s0 + $0xd8] sm:$0xff]  ;;  %v61_v33 = vadd.f32 %v837_v28, %v832_v27 }
   0x9   :  { %v82_v34 = vadd.f32 %v39_v30, %v38_v29  ;;  %v85_v35 = vadd.f32 %v853_v32, %v848_v31  ;;  %v42_v36 = vld [vmem:[%s1320_s0 + $0xe0] sm:$0xff]  ;;  %v43_v37 = vld [vmem:[%s1320_s0 + $0xe8] sm:$0xff]  ;;  %v878_v40 = vld [vmem:[%s1320_s0 + $0x70] sm:$0xff] }
   0xa   :  { %v868_v38 = vld [vmem:[%s1320_s0 + $0x60] sm:$0xff]  ;;  %v873_v39 = vld [vmem:[%s1320_s0 + $0x68] sm:$0xff]  ;;  %v883_v41 = vld [vmem:[%s1320_s0 + $0x78] sm:$0xff]  ;;  %v88_v42 = vadd.f32 %v43_v37, %v42_v36 }
   0xb   :  { %v64_v43 = vadd.f32 %v873_v39, %v868_v38  ;;  %v67_v44 = vadd.f32 %v883_v41, %v878_v40  ;;  %v44_v45 = vld [vmem:[%s1320_s0 + $0xf0] sm:$0xff]  ;;  %v45_v46 = vld [vmem:[%s1320_s0 + $0xf8] sm:$0xff]  ;;  %v111_v55 = vld [vmem:[%s1321_s1 + $0x8] sm:$0xff] }
   0xc   :  { %74 = vadd.xlane.f32.xlu1 %v73_v15  ;;  %v91_v47 = vadd.f32 %v45_v46, %v44_v45  ;;  %v110_v58 = vld [vmem:[%s1321_s1] sm:$0xff]  ;;  %v112_v3 = vld [vmem:[%s1321_s1 + $0x10] sm:$0xff]  ;;  %v113_v9 = vld [vmem:[%s1321_s1 + $0x18] sm:$0xff] }
   0xd   :  { %50 = vadd.xlane.f32.xlu0 %v49_v16 }
   0xe   :  { %77 = vadd.xlane.f32.xlu2 %v76_v17 }
  0x14   :  { %80 = vadd.xlane.f32.xlu1 %v79_v24 }
  0x15   :  { %56 = vadd.xlane.f32.xlu0 %v55_v25 }
  0x16   :  { %59 = vadd.xlane.f32.xlu2 %v58_v26 }
  0x1c   :  { %62 = vadd.xlane.f32.xlu1 %v61_v33  ;;  %v114_v33 = vld [vmem:[%s1321_s1 + $0x20] sm:$0xff] }
  0x1d   :  { %83 = vadd.xlane.f32.xlu0 %v82_v34 }
  0x1e   :  { %86 = vadd.xlane.f32.xlu2 %v85_v35 }
  0x24   :  { %89 = vadd.xlane.f32.xlu1 %v88_v42 }
  0x25   :  { %65 = vadd.xlane.f32.xlu0 %v64_v43 }
  0x26   :  { %68 = vadd.xlane.f32.xlu2 %v67_v44  ;;  %v115_v44 = vld [vmem:[%s1321_s1 + $0x28] sm:$0xff] }
  0x2d   :  { %92 = vadd.xlane.f32.xlu0 %v91_v47 }
  0x77   :  { %v72_v48 = vpop.xlane.xlu1 %71 }
  0x78   :  { %v48_v49 = vpop.xlane.xlu0 %47  ;;  %v102_v10 = vmul.f32 0.00390625, %v72_v48 }
  0x79   :  { %v54_v50 = vpop.xlane.xlu2 %53  ;;  %v94_v56 = vmul.f32 0.00390625, %v48_v49 }
  0x7a   :  { %v96_v62 = vmul.f32 0.00390625, %v54_v50  ;;  %v134_v36 = vmul.f32 %v110_v58, %v102_v10 }
  0x7b   :  { %v126_v63 = vmul.f32 %v110_v58, %v94_v56 }
  0x7c   :  { %v128_v16 = vmul.f32 %v112_v3, %v96_v62 }
  0x7d   :  { %v143_v18 = vsel %vm142_vm0, %v126_v63, 0.0  ;;  %v117_v63 = vld [vmem:[%s1321_s1 + $0x38] sm:$0xff] }
  0x7e   :  { %v146_v42 = vsel %vm142_vm0, %v128_v16, 0.0 }
  0x7f   :  { %v75_v51 = vpop.xlane.xlu1 %74 }
  0x80   :  { %v51_v52 = vpop.xlane.xlu0 %50  ;;  %v103_v7 = vmul.f32 0.00390625, %v75_v51  ;;  %v164_v51 = vsel %vm142_vm0, %v134_v36, 0.0 }
  0x81   :  { %v78_v53 = vpop.xlane.xlu2 %77  ;;  %v95_v54 = vmul.f32 0.00390625, %v51_v52 }
  0x82   :  { %v104_v17 = vmul.f32 0.00390625, %v78_v53  ;;  %v135_v19 = vmul.f32 %v111_v55, %v103_v7 }
  0x83   :  { %v127_v61 = vmul.f32 %v111_v55, %v95_v54 }
  0x84   :  { %v136_v43 = vmul.f32 %v112_v3, %v104_v17  ;;  %v165_v45 = vsel %vm142_vm0, %v135_v19, 0.0 }
  0x85   :  { %v144_v15 = vsel %vm142_vm0, %v127_v61, 0.0  ;;  %v166_v53 = vadd.f32 %v165_v45, %v164_v51  ;;  %v116_v61 = vld [vmem:[%s1321_s1 + $0x30] sm:$0xff] }
  0x86   :  { %v145_v29 = vadd.f32 %v144_v15, %v143_v18  ;;  %v167_v55 = vsel %vm142_vm0, %v136_v43, 0.0 }
  0x87   :  { %v81_v57 = vpop.xlane.xlu1 %80  ;;  %v168_v15 = vadd.f32 %v167_v55, %v166_v53 }
  0x88   :  { %v57_v59 = vpop.xlane.xlu0 %56  ;;  %v105_v30 = vmul.f32 0.00390625, %v81_v57  ;;  %v147_v50 = vadd.f32 %v146_v42, %v145_v29 }
  0x89   :  { %v60_v60 = vpop.xlane.xlu2 %59  ;;  %v97_v8 = vmul.f32 0.00390625, %v57_v59 }
  0x8a   :  { %v98_v25 = vmul.f32 0.00390625, %v60_v60  ;;  %v137_v49 = vmul.f32 %v113_v9, %v105_v30 }
  0x8b   :  { %v129_v24 = vmul.f32 %v113_v9, %v97_v8 }
  0x8c   :  { %v130_v47 = vmul.f32 %v114_v33, %v98_v25  ;;  %v169_v60 = vsel %vm142_vm0, %v137_v49, 0.0 }
  0x8d   :  { %v148_v46 = vsel %vm142_vm0, %v129_v24, 0.0  ;;  %v170_v25 = vadd.f32 %v169_v60, %v168_v15  ;;  %v119_v60 = vld [vmem:[%s1322_s2 + $0x8] sm:$0xff] }
  0x8e   :  { %v149_v54 = vadd.f32 %v148_v46, %v147_v50  ;;  %v150_v56 = vsel %vm142_vm0, %v130_v47, 0.0 }
  0x8f   :  { %v63_v26 = vpop.xlane.xlu1 %62 }
  0x90   :  { %v84_v34 = vpop.xlane.xlu0 %83  ;;  %v99_v37 = vmul.f32 0.00390625, %v63_v26  ;;  %v151_v16 = vadd.f32 %v150_v56, %v149_v54 }
  0x91   :  { %v87_v35 = vpop.xlane.xlu2 %86  ;;  %v106_v48 = vmul.f32 0.00390625, %v84_v34 }
  0x92   :  { %v131_v52 = vmul.f32 %v115_v44, %v99_v37  ;;  %v107_v58 = vmul.f32 0.00390625, %v87_v35 }
  0x93   :  { %v138_v57 = vmul.f32 %v114_v33, %v106_v48 }
  0x94   :  { %v152_v7 = vsel %vm142_vm0, %v131_v52, 0.0  ;;  %v139_v18 = vmul.f32 %v115_v44, %v107_v58 }
  0x95   :  { %v171_v17 = vsel %vm142_vm0, %v138_v57, 0.0  ;;  %v153_v26 = vadd.f32 %v152_v7, %v151_v16 }
  0x96   :  { %v172_v34 = vadd.f32 %v171_v17, %v170_v25  ;;  %v173_v36 = vsel %vm142_vm0, %v139_v18, 0.0  ;;  %v123_v17 = vld [vmem:[%s1322_s2 + $0x28] sm:$0xff]  ;;  %v122_v18 = vld [vmem:[%s1322_s2 + $0x20] sm:$0xff] }
  0x97   :  { %v90_v59 = vpop.xlane.xlu1 %89 }
  0x98   :  { %v66_v62 = vpop.xlane.xlu0 %65  ;;  %v108_v8 = vmul.f32 0.00390625, %v90_v59  ;;  %v174_v46 = vadd.f32 %v173_v36, %v172_v34  ;;  %v120_v59 = vld [vmem:[%s1322_s2 + $0x10] sm:$0xff]  ;;  %v125_v36 = vld [vmem:[%s1322_s2 + $0x38] sm:$0xff] }
  0x99   :  { %v69_v3 = vpop.xlane.xlu2 %68  ;;  %v100_v9 = vmul.f32 0.00390625, %v66_v62 }
  0x9a   :  { %v101_v10 = vmul.f32 0.00390625, %v69_v3  ;;  %v140_v29 = vmul.f32 %v116_v61, %v108_v8 }
  0x9b   :  { %v132_v19 = vmul.f32 %v116_v61, %v100_v9  ;;  %v118_v61 = vld [vmem:[%s1322_s2] sm:$0xff] }
  0x9c   :  { %v133_v24 = vmul.f32 %v117_v63, %v101_v10  ;;  %v175_v43 = vsel %vm142_vm0, %v140_v29, 0.0 }
  0x9d   :  { %v154_v30 = vsel %vm142_vm0, %v132_v19, 0.0  ;;  %v176_v48 = vadd.f32 %v175_v43, %v174_v46  ;;  %v121_v19 = vld [vmem:[%s1322_s2 + $0x18] sm:$0xff] }
  0x9e   :  { %v156_v33 = vsel %vm142_vm0, %v133_v24, 0.0  ;;  %v155_v35 = vadd.f32 %v154_v30, %v153_v26 }
  0xa0   :  { %v157_v37 = vadd.f32 %v156_v33, %v155_v35  ;;  %v93_v42 = vpop.xlane.xlu0 %92 }
  0xa1   :  { %v109_v45 = vmul.f32 0.00390625, %v93_v42 }
  0xa2   :  { %v158_v44 = vrot.slane %v157_v37, 4 }
  0xa3   :  { %v141_v47 = vmul.f32 %v117_v63, %v109_v45 }
  0xa4   :  { %v159_v49 = vadd.f32 %v158_v44, %v157_v37  ;;  %v124_v37 = vld [vmem:[%s1322_s2 + $0x30] sm:$0xff] }
  0xa5   :  { %v177_v50 = vsel %vm142_vm0, %v141_v47, 0.0 }
  0xa6   :  { %v160_v51 = vrot.slane %v159_v49, 2  ;;  %v178_v52 = vadd.f32 %v177_v50, %v176_v48 }
  0xa8   :  { %v161_v53 = vadd.f32 %v160_v51, %v159_v49  ;;  %v179_v54 = vrot.slane %v178_v52, 4 }
  0xaa   :  { %v162_v55 = vrot.slane %v161_v53, 1  ;;  %v180_v56 = vadd.f32 %v179_v54, %v178_v52 }
  0xac   :  { %v163_v57 = vadd.f32 %v162_v55, %v161_v53  ;;  %v181_v58 = vrot.slane %v180_v56, 2 }
  0xae   :  { %v185_v62 = vmax.f32 %v163_v57, 0.0  ;;  %v182_v63 = vadd.f32 %v181_v58, %v180_v56 }
  0xb0   :  { %v189_v3 = vmul.f32 %v185_v62, %v120_v59  ;;  %v188_v7 = vmul.f32 %v185_v62, %v119_v60  ;;  %v187_v8 = vmul.f32 %v185_v62, %v118_v61  ;;  %v183_v9 = vrot.slane %v182_v63, 1 }
  0xb1   :  { %v192_v25 = vmul.f32 %v185_v62, %v123_v17  ;;  %v191_v26 = vmul.f32 %v185_v62, %v122_v18  ;;  %v190_v29 = vmul.f32 %v185_v62, %v121_v19  ;;  %v194_v42 = vmul.f32 %v185_v62, %v125_v36 }
  0xb2   :  { %v209_v10 = vsel %vm142_vm0, %v189_v3, 0.0  ;;  %v206_v15 = vsel %vm142_vm0, %v188_v7, 0.0  ;;  %v203_v16 = vsel %vm142_vm0, %v187_v8, 0.0  ;;  %v184_v24 = vadd.f32 %v183_v9, %v182_v63 }
  0xb3   :  { %210 = vadd.xlane.f32.xlu0 %v209_v10  ;;  %207 = vadd.xlane.f32.xlu2 %v206_v15  ;;  %v218_v33 = vsel %vm142_vm0, %v192_v25, 0.0  ;;  %v215_v34 = vsel %vm142_vm0, %v191_v26, 0.0  ;;  %v212_v35 = vsel %vm142_vm0, %v190_v29, 0.0  ;;  %v193_v45 = vmul.f32 %v185_v62, %v124_v37 }
  0xb4   :  { %204 = vadd.xlane.f32.xlu1 %v203_v16  ;;  %v186_v30 = vmax.f32 %v184_v24, 0.0  ;;  %v224_v46 = vsel %vm142_vm0, %v194_v42, 0.0 }
  0xb5   :  { %v221_v47 = vsel %vm142_vm0, %v193_v45, 0.0 }
  0xb6   :  { %v195_v43 = vmul.f32 %v186_v30, %v118_v61  ;;  %v197_v48 = vmul.f32 %v186_v30, %v120_v59  ;;  %v198_v49 = vmul.f32 %v186_v30, %v121_v19  ;;  %v196_v50 = vmul.f32 %v186_v30, %v119_v60 }
  0xb7   :  { %v200_v54 = vmul.f32 %v186_v30, %v123_v17  ;;  %v201_v55 = vmul.f32 %v186_v30, %v124_v37  ;;  %v199_v56 = vmul.f32 %v186_v30, %v122_v18  ;;  %v202_v60 = vmul.f32 %v186_v30, %v125_v36 }
  0xb8   :  { %v227_v44 = vsel %vm142_vm0, %v195_v43, 0.0  ;;  %v233_v51 = vsel %vm142_vm0, %v197_v48, 0.0  ;;  %v236_v52 = vsel %vm142_vm0, %v198_v49, 0.0  ;;  %v230_v53 = vsel %vm142_vm0, %v196_v50, 0.0 }
  0xb9   :  { %v242_v57 = vsel %vm142_vm0, %v200_v54, 0.0  ;;  %v245_v58 = vsel %vm142_vm0, %v201_v55, 0.0  ;;  %v239_v59 = vsel %vm142_vm0, %v199_v56, 0.0  ;;  %v248_v61 = vsel %vm142_vm0, %v202_v60, 0.0 }
  0xbb   :  { %219 = vadd.xlane.f32.xlu0 %v218_v33  ;;  %216 = vadd.xlane.f32.xlu2 %v215_v34 }
  0xbc   :  { %213 = vadd.xlane.f32.xlu1 %v212_v35 }
  0xc3   :  { %225 = vadd.xlane.f32.xlu2 %v224_v46  ;;  %228 = vadd.xlane.f32.xlu0 %v227_v44 }
  0xc4   :  { %222 = vadd.xlane.f32.xlu1 %v221_v47 }
  0xcb   :  { %234 = vadd.xlane.f32.xlu2 %v233_v51  ;;  %237 = vadd.xlane.f32.xlu0 %v236_v52 }
  0xcc   :  { %231 = vadd.xlane.f32.xlu1 %v230_v53 }
  0xd3   :  { %243 = vadd.xlane.f32.xlu2 %v242_v57  ;;  %246 = vadd.xlane.f32.xlu0 %v245_v58 }
  0xd4   :  { %240 = vadd.xlane.f32.xlu1 %v239_v59 }
  0xdc   :  { %249 = vadd.xlane.f32.xlu1 %v248_v61 }
 0x126   :  { %v208_v62 = vpop.xlane.xlu2 %207  ;;  %v211_v63 = vpop.xlane.xlu0 %210 }
 0x127   :  { %v624_v3 = vmul.f32 -1.442695, %v208_v62  ;;  %v205_v7 = vpop.xlane.xlu1 %204  ;;  %v625_v8 = vmul.f32 -1.442695, %v211_v63 }
 0x128   :  { %v623_v9 = vmul.f32 -1.442695, %v205_v7 }
 0x129   :  { %639 = vpow2.f32 %v624_v3 }
 0x12a   :  { %641 = vpow2.f32 %v623_v9 }
 0x12b   :  { %643 = vpow2.f32 %v625_v8 }
 0x12e   :  { %v217_v10 = vpop.xlane.xlu2 %216  ;;  %v220_v15 = vpop.xlane.xlu0 %219 }
 0x12f   :  { %v640_v16 = vpop.eup %639  ;;  %v627_v17 = vmul.f32 -1.442695, %v217_v10  ;;  %v214_v18 = vpop.xlane.xlu1 %213  ;;  %v628_v30 = vmul.f32 -1.442695, %v220_v15 }
 0x130   :  { %v642_v19 = vpop.eup %641  ;;  %v300_v24 = vadd.f32 1.0, %v640_v16  ;;  %v626_v25 = vmul.f32 -1.442695, %v214_v18 }
 0x131   :  { %v644_v26 = vpop.eup %643  ;;  %v299_v29 = vadd.f32 1.0, %v642_v19  ;;  %645 = vpow2.f32 %v627_v17 }
 0x132   :  { %647 = vrcp.f32 %v300_v24  ;;  %v975_v33 = vadd.f32 1.0, %v644_v26  ;;  %v339_v34 = vand.u32 2147483647, %v300_v24  ;;  %v341_v35 = vand.u32 2147483648, %v300_v24 }
 0x133   :  { %649 = vrcp.f32 %v299_v29  ;;  %v324_v36 = vand.u32 2147483647, %v299_v29  ;;  %v326_v37 = vand.u32 2147483648, %v299_v29  ;;  %vm335_vm1 = vweird.f32 %v300_v24 }
 0x134   :  { %651 = vpow2.f32 %v626_v25  ;;  %vm320_vm2 = vweird.f32 %v299_v29  ;;  %vm980_vm3 = vcmp.eq.f32.partialorder %v339_v34, 8.507059e+37  ;;  %v342_v51 = vor.u32 1.1754944e-38, %v341_v35 }
 0x135   :  { %653 = vpow2.f32 %v628_v30  ;;  %vm984_vm4 = vcmp.eq.f32.partialorder %v324_v36, 8.507059e+37  ;;  %v327_v56 = vor.u32 1.1754944e-38, %v326_v37  ;;  %vm350_vm5 = vweird.f32 %v975_v33 }
 0x136   :  { %655 = vrcp.f32 %v975_v33  ;;  %v226_v42 = vpop.xlane.xlu2 %225  ;;  %v354_v59 = vand.u32 2147483647, %v975_v33  ;;  %v356_v63 = vand.u32 2147483648, %v975_v33  ;;  %v229_v7 = vpop.xlane.xlu0 %228 }
 0x137   :  { %v646_v43 = vpop.eup %645  ;;  %v223_v45 = vpop.xlane.xlu1 %222  ;;  %v630_v47 = vmul.f32 -1.442695, %v226_v42  ;;  %v1003_v19 = vmul.f32 -1.442695, %v229_v7 }
 0x138   :  { %v648_v46 = vpop.eup %647  ;;  %v978_v44 = vadd.f32 1.0, %v646_v43  ;;  %v629_v52 = vmul.f32 -1.442695, %v223_v45  ;;  %vm999_vm8 = vcmp.eq.f32.partialorder %v354_v59, 8.507059e+37  ;;  %v357_v30 = vor.u32 1.1754944e-38, %v356_v63 }
 0x139   :  { %v650_v48 = vpop.eup %649  ;;  %v331_v49 = vmul.f32 %v648_v46, %v300_v24  ;;  %vm336_vm6 = vweird.f32 %v648_v46 }
 0x13a   :  { %v652_v53 = vpop.eup %651  ;;  %v316_v54 = vmul.f32 %v650_v48, %v299_v29  ;;  %657 = vrcp.f32 %v978_v44  ;;  %vm321_vm7 = vweird.f32 %v650_v48  ;;  %v384_v15 = vand.u32 2147483647, %v978_v44  ;;  %vm337_vm9 = vmor %vm335_vm1, %vm336_vm6 }
 0x13b   :  { %v654_v57 = vpop.eup %653  ;;  %v332_v58 = vsub.f32 1.0, %v331_v49  ;;  %v991_v60 = vadd.f32 1.0, %v652_v53  ;;  %659 = vpow2.f32 %v630_v47  ;;  %v386_v34 = vand.u32 2147483648, %v978_v44  ;;  %vm322_vm10 = vmor %vm320_vm2, %vm321_vm7 }
 0x13c   :  { %v656_v61 = vpop.eup %655  ;;  %v317_v62 = vsub.f32 1.0, %v316_v54  ;;  %v994_v3 = vadd.f32 1.0, %v654_v57  ;;  %661 = vpow2.f32 %v629_v52  ;;  %vm380_vm12 = vweird.f32 %v978_v44 }
 0x13d   :  { %v333_v8 = vmul.f32 %v648_v46, %v332_v58  ;;  %v346_v9 = vmul.f32 %v656_v61, %v975_v33  ;;  %663 = vrcp.f32 %v991_v60  ;;  %vm351_vm11 = vweird.f32 %v656_v61 }
 0x13e   :  { %v318_v10 = vmul.f32 %v650_v48, %v317_v62  ;;  %665 = vrcp.f32 %v994_v3  ;;  %vm1016_vm13 = vcmp.eq.f32.partialorder %v384_v15, 8.507059e+37  ;;  %vm352_vm14 = vmor %vm350_vm5, %vm351_vm11  ;;  %v387_v54 = vor.u32 1.1754944e-38, %v386_v34 }
 0x13f   :  { %v334_v16 = vadd.f32 %v648_v46, %v333_v8  ;;  %v347_v17 = vsub.f32 1.0, %v346_v9  ;;  %vm365_vm0 = vweird.f32 %v991_v60  ;;  %v232_v63 = vpop.xlane.xlu1 %231  ;;  %v369_v8 = vand.u32 2147483647, %v991_v60 }
 0x140   :  { %v1005_v25 = vpop.eup %657  ;;  %v319_v26 = vadd.f32 %v650_v48, %v318_v10  ;;  %v371_v9 = vand.u32 2147483648, %v991_v60  ;;  %v399_v10 = vand.u32 2147483647, %v994_v3 }
 0x141   :  { %v338_v35 = vsel %vm337_vm9, %v648_v46, %v334_v16  ;;  %v348_v36 = vmul.f32 %v656_v61, %v347_v17  ;;  %v376_v37 = vmul.f32 %v1005_v25, %v978_v44  ;;  %v660_v42 = vpop.eup %659  ;;  %vm381_vm15 = vweird.f32 %v1005_v25 }
 0x142   :  { %v343_v43 = vsel %vm980_vm3, %v342_v51, %v338_v35  ;;  %v323_v24 = vsel %vm322_vm10, %v650_v48, %v319_v26  ;;  %v662_v47 = vpop.eup %661  ;;  %vm382_vm1 = vmor %vm380_vm12, %vm381_vm15  ;;  %vm395_vm3 = vweird.f32 %v994_v3  ;;  %v401_v16 = vand.u32 2147483648, %v994_v3  ;;  %v238_v26 = vpop.xlane.xlu0 %237 }
 0x143   :  { %v557_v29 = vmul.f32 %v343_v43, %v778_v11  ;;  %v558_v46 = vmul.f32 %v343_v43, %v783_v12  ;;  %v328_v49 = vsel %vm984_vm4, %v327_v56, %v323_v24  ;;  %v349_v52 = vadd.f32 %v656_v61, %v348_v36  ;;  %v664_v53 = vpop.eup %663 }
 0x144   :  { %v555_v50 = vmul.f32 %v328_v49, %v746_v2  ;;  %v556_v48 = vmul.f32 %v328_v49, %v753_v4  ;;  %v377_v51 = vsub.f32 1.0, %v376_v37  ;;  %v361_v12 = vmul.f32 %v664_v53, %v991_v60  ;;  %v235_v2 = vpop.xlane.xlu2 %234  ;;  %v666_v55 = vpop.eup %665 }
 0x145   :  { %589 = vst [vmem:[%s1323_s3 + $0x10] sm:$0xff] %v557_v29  ;;  %v353_v11 = vsel %vm352_vm14, %v656_v61, %v349_v52  ;;  %v1041_v56 = vadd.f32 1.0, %v660_v42  ;;  %v1043_v57 = vadd.f32 1.0, %v662_v47  ;;  %v391_v62 = vmul.f32 %v666_v55, %v994_v3 }
 0x146   :  { %590 = vst [vmem:[%s1323_s3 + $0x18] sm:$0xff] %v558_v46  ;;  %v358_v4 = vsel %vm999_vm8, %v357_v30, %v353_v11  ;;  %v378_v33 = vmul.f32 %v1005_v25, %v377_v51  ;;  %v362_v61 = vsub.f32 1.0, %v361_v12  ;;  %vm366_vm2 = vweird.f32 %v664_v53 }
 0x147   :  { %587 = vst [vmem:[%s1323_s3] sm:$0xff] %v555_v50  ;;  %v559_v58 = vmul.f32 %v358_v4, %v758_v5  ;;  %v560_v59 = vmul.f32 %v358_v4, %v763_v6  ;;  %667 = vrcp.f32 %v1041_v56  ;;  %v392_v6 = vsub.f32 1.0, %v391_v62  ;;  %vm367_vm5 = vmor %vm365_vm0, %vm366_vm2 }
 0x148   :  { %588 = vst [vmem:[%s1323_s3 + $0x8] sm:$0xff] %v556_v48  ;;  %v379_v7 = vadd.f32 %v1005_v25, %v378_v33  ;;  %v363_v5 = vmul.f32 %v664_v53, %v362_v61  ;;  %669 = vrcp.f32 %v1043_v57  ;;  %vm396_vm4 = vweird.f32 %v666_v55 }
 0x149   :  { %591 = vst [vmem:[%s1323_s3 + $0x20] sm:$0xff] %v559_v58  ;;  %v393_v18 = vmul.f32 %v666_v55, %v392_v6  ;;  %vm370_vm6 = vcmp.eq.f32.partialorder %v369_v8, 8.507059e+37  ;;  %vm1080_vm7 = vcmp.eq.f32.partialorder %v399_v10, 8.507059e+37  ;;  %671 = vpow2.f32 %v1003_v19  ;;  %vm397_vm8 = vmor %vm395_vm3, %vm396_vm4 }
 0x14a   :  { %592 = vst [vmem:[%s1323_s3 + $0x28] sm:$0xff] %v560_v59  ;;  %v383_v15 = vsel %vm382_vm1, %v1005_v25, %v379_v7  ;;  %v364_v17 = vadd.f32 %v664_v53, %v363_v5  ;;  %v372_v25 = vor.u32 1.1754944e-38, %v371_v9  ;;  %v633_v60 = vmul.f32 -1.442695, %v235_v2  ;;  %v247_v58 = vpop.xlane.xlu0 %246 }
 0x14b   :  { %v388_v44 = vsel %vm1016_vm13, %v387_v54, %v383_v15  ;;  %v394_v36 = vadd.f32 %v666_v55, %v393_v18  ;;  %v632_v43 = vmul.f32 -1.442695, %v232_v63  ;;  %vm425_vm9 = vweird.f32 %v1041_v56 }
 0x14c   :  { %v563_v30 = vmul.f32 %v388_v44, %v818_v22  ;;  %v564_v34 = vmul.f32 %v388_v44, %v823_v23  ;;  %v368_v35 = vsel %vm367_vm5, %v664_v53, %v364_v17  ;;  %v402_v23 = vor.u32 1.1754944e-38, %v401_v16  ;;  %v244_v29 = vpop.xlane.xlu2 %243  ;;  %v241_v53 = vpop.xlane.xlu1 %240 }
 0x14d   :  { %v668_v42 = vpop.eup %667  ;;  %v373_v22 = vsel %vm370_vm6, %v372_v25, %v368_v35  ;;  %v398_v45 = vsel %vm397_vm8, %v666_v55, %v394_v36  ;;  %673 = vpow2.f32 %v633_v60  ;;  %v431_v50 = vand.u32 2147483648, %v1041_v56 }
 0x14e   :  { %595 = vst [vmem:[%s1323_s3 + $0x40] sm:$0xff] %v563_v30  ;;  %v561_v24 = vmul.f32 %v373_v22, %v808_v20  ;;  %v562_v19 = vmul.f32 %v373_v22, %v813_v21  ;;  %v421_v47 = vmul.f32 %v668_v42, %v1041_v56  ;;  %v670_v46 = vpop.eup %669  ;;  %v403_v3 = vsel %vm1080_vm7, %v402_v23, %v398_v45 }
 0x14f   :  { %596 = vst [vmem:[%s1323_s3 + $0x48] sm:$0xff] %v564_v34  ;;  %v565_v49 = vmul.f32 %v403_v3, %v832_v27  ;;  %v566_v20 = vmul.f32 %v403_v3, %v837_v28  ;;  %v406_v52 = vmul.f32 %v670_v46, %v1043_v57  ;;  %675 = vpow2.f32 %v632_v43  ;;  %v672_v54 = vpop.eup %671 }
 0x150   :  { %593 = vst [vmem:[%s1323_s3 + $0x30] sm:$0xff] %v561_v24  ;;  %v422_v21 = vsub.f32 1.0, %v421_v47  ;;  %v634_v48 = vmul.f32 -1.442695, %v238_v26  ;;  %v636_v51 = vmul.f32 -1.442695, %v244_v29  ;;  %vm426_vm10 = vweird.f32 %v668_v42 }
 0x151   :  { %594 = vst [vmem:[%s1323_s3 + $0x38] sm:$0xff] %v562_v19  ;;  %v429_v28 = vand.u32 2147483647, %v1041_v56  ;;  %v407_v11 = vsub.f32 1.0, %v406_v52  ;;  %v414_v12 = vand.u32 2147483647, %v1043_v57  ;;  %vm411_vm11 = vweird.f32 %v670_v46  ;;  %vm427_vm12 = vmor %vm425_vm9, %vm426_vm10 }
 0x152   :  { %597 = vst [vmem:[%s1323_s3 + $0x50] sm:$0xff] %v565_v49  ;;  %v423_v27 = vmul.f32 %v668_v42, %v422_v21  ;;  %v416_v2 = vand.u32 2147483648, %v1043_v57  ;;  %v1118_v55 = vadd.f32 1.0, %v672_v54  ;;  %677 = vpow2.f32 %v634_v48 }
 0x153   :  { %598 = vst [vmem:[%s1323_s3 + $0x58] sm:$0xff] %v566_v20  ;;  %v408_v33 = vmul.f32 %v670_v46, %v407_v11  ;;  %679 = vpow2.f32 %v636_v51  ;;  %v674_v59 = vpop.eup %673  ;;  %v432_v61 = vor.u32 1.1754944e-38, %v431_v50  ;;  %vm410_vm13 = vweird.f32 %v1043_v57 }
 0x154   :  { %v424_v4 = vadd.f32 %v668_v42, %v423_v27  ;;  %681 = vrcp.f32 %v1118_v55  ;;  %v635_v62 = vmul.f32 -1.442695, %v241_v53  ;;  %vm430_vm14 = vcmp.eq.f32.partialorder %v429_v28, 8.507059e+37  ;;  %vm412_vm15 = vmor %vm410_vm13, %vm411_vm11  ;;  %v250_v34 = vpop.xlane.xlu1 %249 }
 0x155   :  { %v409_v7 = vadd.f32 %v670_v46, %v408_v33  ;;  %v1124_v8 = vadd.f32 1.0, %v674_v59  ;;  %v676_v9 = vpop.eup %675  ;;  %vm415_vm0 = vcmp.eq.f32.partialorder %v414_v12, 8.507059e+37  ;;  %v417_v6 = vor.u32 1.1754944e-38, %v416_v2 }
 0x156   :  { %v428_v63 = vsel %vm427_vm12, %v668_v42, %v424_v4  ;;  %v637_v10 = vmul.f32 -1.442695, %v247_v58  ;;  %v444_v17 = vand.u32 2147483647, %v1118_v55  ;;  %v446_v35 = vand.u32 2147483648, %v1118_v55 }
 0x157   :  { %v433_v5 = vsel %vm430_vm14, %v432_v61, %v428_v63  ;;  %v413_v57 = vsel %vm412_vm15, %v670_v46, %v409_v7  ;;  %683 = vrcp.f32 %v1124_v8  ;;  %v476_v37 = vand.u32 2147483648, %v1124_v8 }
 0x158   :  { %v569_v56 = vmul.f32 %v433_v5, %v878_v40  ;;  %v570_v15 = vmul.f32 %v433_v5, %v883_v41  ;;  %v678_v16 = vpop.eup %677  ;;  %v418_v44 = vsel %vm415_vm0, %v417_v6, %v413_v57  ;;  %685 = vpow2.f32 %v635_v62 }
 0x159   :  { %v680_v18 = vpop.eup %679  ;;  %v567_v26 = vmul.f32 %v418_v44, %v868_v38  ;;  %v568_v30 = vmul.f32 %v418_v44, %v873_v39  ;;  %v1136_v40 = vadd.f32 1.0, %v676_v9  ;;  %v1138_v41 = vadd.f32 1.0, %v678_v16 }
 0x15a   :  { %601 = vst [vmem:[%s1323_s3 + $0x70] sm:$0xff] %v569_v56  ;;  %v682_v25 = vpop.eup %681  ;;  %v1144_v36 = vadd.f32 1.0, %v680_v18  ;;  %687 = vpow2.f32 %v637_v10  ;;  %v474_v39 = vand.u32 2147483647, %v1124_v8  ;;  %vm440_vm1 = vweird.f32 %v1118_v55 }
 0x15b   :  { %602 = vst [vmem:[%s1323_s3 + $0x78] sm:$0xff] %v570_v15  ;;  %v436_v38 = vmul.f32 %v682_v25, %v1118_v55  ;;  %689 = vrcp.f32 %v1136_v40  ;;  %v638_v42 = vmul.f32 -1.442695, %v250_v34  ;;  %vm1158_vm2 = vcmp.eq.f32.partialorder %v444_v17, 8.507059e+37 }
 0x15c   :  { %599 = vst [vmem:[%s1323_s3 + $0x60] sm:$0xff] %v567_v26  ;;  %691 = vrcp.f32 %v1138_v41  ;;  %v461_v43 = vand.u32 2147483648, %v1136_v40  ;;  %v447_v19 = vor.u32 1.1754944e-38, %v446_v35  ;;  %vm470_vm3 = vweird.f32 %v1124_v8 }
 0x15d   :  { %600 = vst [vmem:[%s1323_s3 + $0x68] sm:$0xff] %v568_v30  ;;  %v684_v22 = vpop.eup %683  ;;  %v437_v23 = vsub.f32 1.0, %v436_v38  ;;  %693 = vrcp.f32 %v1144_v36  ;;  %v459_v47 = vand.u32 2147483647, %v1136_v40  ;;  %vm441_vm4 = vweird.f32 %v682_v25 }
 0x15e   :  { %v686_v24 = vpop.eup %685  ;;  %v466_v45 = vmul.f32 %v684_v22, %v1124_v8  ;;  %vm1167_vm5 = vcmp.eq.f32.partialorder %v474_v39, 8.507059e+37  ;;  %v477_v3 = vor.u32 1.1754944e-38, %v476_v37  ;;  %vm455_vm6 = vweird.f32 %v1136_v40  ;;  %vm442_vm9 = vmor %vm440_vm1, %vm441_vm4  ;;  %v704_v39 = vld [vmem:[%s1320_s0 + $0x98] sm:$0xff] }
 0x15f   :  { %v438_v29 = vmul.f32 %v682_v25, %v437_v23  ;;  %v489_v21 = vand.u32 2147483647, %v1138_v41  ;;  %695 = vpow2.f32 %v638_v42  ;;  %vm471_vm7 = vweird.f32 %v684_v22  ;;  %v705_v23 = vld [vmem:[%s1320_s0 + $0xb0] sm:$0xff] }
 0x160   :  { %v688_v49 = vpop.eup %687  ;;  %v467_v20 = vsub.f32 1.0, %v466_v45  ;;  %v462_v50 = vor.u32 1.1754944e-38, %v461_v43  ;;  %vm485_vm8 = vweird.f32 %v1138_v41  ;;  %v491_v48 = vand.u32 2147483648, %v1138_v41  ;;  %vm472_vm11 = vmor %vm470_vm3, %vm471_vm7  ;;  %v706_v43 = vld [vmem:[%s1320_s0 + $0xb8] sm:$0xff] }
 0x161   :  { %v690_v52 = vpop.eup %689  ;;  %v439_v53 = vadd.f32 %v682_v25, %v438_v29  ;;  %vm1179_vm10 = vcmp.eq.f32.partialorder %v459_v47, 8.507059e+37  ;;  %v519_v11 = vand.u32 2147483647, %v1144_v36  ;;  %v1184_v12 = vadd.f32 1.0, %v686_v24 }
 0x162   :  { %v692_v51 = vpop.eup %691  ;;  %v468_v54 = vmul.f32 %v684_v22, %v467_v20  ;;  %v451_v27 = vmul.f32 %v690_v52, %v1136_v40  ;;  %v521_v58 = vand.u32 2147483648, %v1144_v36  ;;  %v1188_v59 = vadd.f32 1.0, %v688_v49 }
 0x163   :  { %v694_v2 = vpop.eup %693  ;;  %v443_v4 = vsel %vm442_vm9, %v682_v25, %v439_v53  ;;  %v481_v33 = vmul.f32 %v692_v51, %v1138_v41  ;;  %vm456_vm12 = vweird.f32 %v690_v52  ;;  %697 = vrcp.f32 %v1184_v12 }
 0x164   :  { %v448_v55 = vsel %vm1158_vm2, %v447_v19, %v443_v4  ;;  %v469_v61 = vadd.f32 %v684_v22, %v468_v54  ;;  %v452_v62 = vsub.f32 1.0, %v451_v27  ;;  %v511_v63 = vmul.f32 %v694_v2, %v1144_v36  ;;  %vm457_vm15 = vmor %vm455_vm6, %vm456_vm12 }
 0x165   :  { %v571_v7 = vmul.f32 %v448_v55, %v736_v0  ;;  %v572_v9 = vmul.f32 %v448_v55, %v741_v1  ;;  %v482_v5 = vsub.f32 1.0, %v481_v33  ;;  %v696_v6 = vpop.eup %695  ;;  %vm486_vm13 = vweird.f32 %v692_v51  ;;  %v708_v33 = vld [vmem:[%s1320_s0 + $0xc8] sm:$0xff] }
 0x166   :  { %v473_v10 = vsel %vm472_vm11, %v684_v22, %v469_v61  ;;  %v453_v56 = vmul.f32 %v690_v52, %v452_v62  ;;  %v512_v15 = vsub.f32 1.0, %v511_v63  ;;  %vm516_vm14 = vweird.f32 %v694_v2  ;;  %vm1222_vm1 = vmor %vm485_vm8, %vm486_vm13 }
 0x167   :  { %603 = vst [vmem:[%s1323_s3 + $0x80] sm:$0xff] %v571_v7  ;;  %v478_v0 = vsel %vm1167_vm5, %v477_v3, %v473_v10  ;;  %v483_v1 = vmul.f32 %v692_v51, %v482_v5  ;;  %vm1212_vm0 = vcmp.eq.f32.partialorder %v489_v21, 8.507059e+37  ;;  %v492_v26 = vor.u32 1.1754944e-38, %v491_v48 }
 0x168   :  { %604 = vst [vmem:[%s1323_s3 + $0x88] sm:$0xff] %v572_v9  ;;  %v575_v8 = vmul.f32 %v478_v0, %v788_v13  ;;  %v576_v57 = vmul.f32 %v478_v0, %v793_v14  ;;  %v454_v16 = vadd.f32 %v690_v52, %v453_v56  ;;  %v513_v44 = vmul.f32 %v694_v2, %v512_v15  ;;  %v709_v9 = vld [vmem:[%s1320_s0 + $0xe0] sm:$0xff] }
 0x169   :  { %v484_v17 = vadd.f32 %v692_v51, %v483_v1  ;;  %699 = vrcp.f32 %v1188_v59  ;;  %vm515_vm2 = vweird.f32 %v1144_v36  ;;  %v1227_v40 = vadd.f32 1.0, %v696_v6  ;;  %v698_v35 = vpop.eup %697  ;;  %v703_v36 = vld [vmem:[%s1320_s0 + $0x90] sm:$0xff]  ;;  %v710_v6 = vld [vmem:[%s1320_s0 + $0xe8] sm:$0xff] }
 0x16a   :  { %607 = vst [vmem:[%s1323_s3 + $0xa0] sm:$0xff] %v575_v8  ;;  %v458_v13 = vsel %vm457_vm15, %v690_v52, %v454_v16  ;;  %v514_v30 = vadd.f32 %v694_v2, %v513_v44  ;;  %vm517_vm3 = vmor %vm515_vm2, %vm516_vm14  ;;  %vm520_vm4 = vcmp.eq.f32.partialorder %v519_v11, 8.507059e+37  ;;  %v522_v41 = vor.u32 1.1754944e-38, %v521_v58  ;;  %v712_v44 = vld [vmem:[%s1320_s0 + $0xf8] sm:$0xff] }
 0x16b   :  { %608 = vst [vmem:[%s1323_s3 + $0xa8] sm:$0xff] %v576_v57  ;;  %v463_v34 = vsel %vm1179_vm10, %v462_v50, %v458_v13  ;;  %v488_v25 = vsel %vm1222_vm1, %v692_v51, %v484_v17  ;;  %v496_v45 = vmul.f32 %v698_v35, %v1184_v12  ;;  %701 = vrcp.f32 %v1227_v40  ;;  %v711_v57 = vld [vmem:[%s1320_s0 + $0xf0] sm:$0xff] }
 0x16c   :  { %v573_v38 = vmul.f32 %v703_v36, %v463_v34  ;;  %v574_v37 = vmul.f32 %v704_v39, %v463_v34  ;;  %v493_v42 = vsel %vm1212_vm0, %v492_v26, %v488_v25  ;;  %v518_v22 = vsel %vm517_vm3, %v694_v2, %v514_v30 }
 0x16d   :  { %v577_v60 = vmul.f32 %v705_v23, %v493_v42  ;;  %v578_v24 = vmul.f32 %v706_v43, %v493_v42  ;;  %v523_v19 = vsel %vm520_vm4, %v522_v41, %v518_v22  ;;  %v497_v3 = vsub.f32 1.0, %v496_v45 }
 0x16e   :  { %605 = vst [vmem:[%s1323_s3 + $0x90] sm:$0xff] %v573_v38  ;;  %v581_v47 = vmul.f32 %v523_v19, %v848_v31  ;;  %v582_v46 = vmul.f32 %v523_v19, %v853_v32  ;;  %v506_v49 = vand.u32 2147483648, %v1184_v12  ;;  %vm501_vm5 = vweird.f32 %v698_v35 }
 0x16f   :  { %v700_v29 = vpop.eup %699  ;;  %606 = vst [vmem:[%s1323_s3 + $0x98] sm:$0xff] %v574_v37  ;;  %v498_v31 = vmul.f32 %v698_v35, %v497_v3  ;;  %v504_v21 = vand.u32 2147483647, %v1184_v12  ;;  %vm500_vm6 = vweird.f32 %v1184_v12  ;;  %v536_v53 = vand.u32 2147483648, %v1188_v59  ;;  %v707_v12 = vld [vmem:[%s1320_s0 + $0xc0] sm:$0xff] }
 0x170   :  { %609 = vst [vmem:[%s1323_s3 + $0xb0] sm:$0xff] %v577_v60  ;;  %v526_v20 = vmul.f32 %v700_v29, %v1188_v59  ;;  %vm502_vm7 = vmor %vm500_vm6, %vm501_vm5  ;;  %v507_v50 = vor.u32 1.1754944e-38, %v506_v49  ;;  %vm531_vm8 = vweird.f32 %v700_v29  ;;  %v534_v51 = vand.u32 2147483647, %v1188_v59 }
 0x171   :  { %610 = vst [vmem:[%s1323_s3 + $0xb8] sm:$0xff] %v578_v24  ;;  %v499_v52 = vadd.f32 %v698_v35, %v498_v31  ;;  %v702_v54 = vpop.eup %701  ;;  %vm505_vm9 = vcmp.eq.f32.partialorder %v504_v21, 8.507059e+37  ;;  %vm530_vm10 = vweird.f32 %v1188_v59  ;;  %v537_v55 = vor.u32 1.1754944e-38, %v536_v53 }
 0x172   :  { %613 = vst [vmem:[%s1323_s3 + $0xd0] sm:$0xff] %v581_v47  ;;  %v527_v32 = vsub.f32 1.0, %v526_v20  ;;  %v541_v2 = vmul.f32 %v702_v54, %v1227_v40  ;;  %vm532_vm11 = vmor %vm530_vm10, %vm531_vm8  ;;  %vm535_vm12 = vcmp.eq.f32.partialorder %v534_v51, 8.507059e+37  ;;  %v549_v63 = vand.u32 2147483647, %v1227_v40 }
 0x173   :  { %614 = vst [vmem:[%s1323_s3 + $0xd8] sm:$0xff] %v582_v46  ;;  %v503_v27 = vsel %vm502_vm7, %v698_v35, %v499_v52  ;;  %v551_v7 = vand.u32 2147483648, %v1227_v40  ;;  %vm546_vm13 = vweird.f32 %v702_v54  ;;  %vm545_vm14 = vweird.f32 %v1227_v40 }
 0x174   :  { %v528_v48 = vmul.f32 %v700_v29, %v527_v32  ;;  %v508_v28 = vsel %vm505_vm9, %v507_v50, %v503_v27  ;;  %v542_v62 = vsub.f32 1.0, %v541_v2  ;;  %vm547_vm15 = vmor %vm545_vm14, %vm546_vm13  ;;  %vm550_vm0 = vcmp.eq.f32.partialorder %v549_v63, 8.507059e+37 }
 0x175   :  { %v579_v4 = vmul.f32 %v707_v12, %v508_v28  ;;  %v580_v58 = vmul.f32 %v708_v33, %v508_v28  ;;  %v552_v0 = vor.u32 1.1754944e-38, %v551_v7 }
 0x176   :  { %v529_v11 = vadd.f32 %v700_v29, %v528_v48  ;;  %v543_v56 = vmul.f32 %v702_v54, %v542_v62 }
 0x177   :  { %611 = vst [vmem:[%s1323_s3 + $0xc0] sm:$0xff] %v579_v4 }
 0x178   :  { %v533_v61 = vsel %vm532_vm11, %v700_v29, %v529_v11  ;;  %612 = vst [vmem:[%s1323_s3 + $0xc8] sm:$0xff] %v580_v58  ;;  %v544_v15 = vadd.f32 %v702_v54, %v543_v56 }
 0x179   :  { %v538_v59 = vsel %vm535_vm12, %v537_v55, %v533_v61 }
 0x17a   :  { %v583_v5 = vmul.f32 %v709_v9, %v538_v59  ;;  %v584_v10 = vmul.f32 %v710_v6, %v538_v59  ;;  %v548_v1 = vsel %vm547_vm15, %v702_v54, %v544_v15 }
 0x17b   :  { %v553_v8 = vsel %vm550_vm0, %v552_v0, %v548_v1 }
 0x17c   :  { %615 = vst [vmem:[%s1323_s3 + $0xe0] sm:$0xff] %v583_v5  ;;  %v585_v16 = vmul.f32 %v711_v57, %v553_v8  ;;  %v586_v17 = vmul.f32 %v712_v44, %v553_v8 }
 0x17d   :  { %616 = vst [vmem:[%s1323_s3 + $0xe8] sm:$0xff] %v584_v10 }
 0x17e   :  { %617 = vst [vmem:[%s1323_s3 + $0xf0] sm:$0xff] %v585_v16 }
 0x17f   :  { %618 = vst [vmem:[%s1323_s3 + $0xf8] sm:$0xff] %v586_v17 }

</bundles_post_ra>
